<compile_context>
chip_gen: v7x
topology: tpu7x:2x2x1
jax: 0.10.0
libtpu: 0.0.40
codegen_flags: <defaults>
</compile_context>

<pallas_src>
import jax
import jax.numpy as jnp
from jax.experimental import pallas as pl
from jax.experimental.pallas import tpu as pltpu

_F32 = jnp.float32
_BF16 = jnp.bfloat16


def _round_up(x, m):
    return ((x + m - 1) // m) * m


def _cdiv(a, b):
    return -(-a // b)


# ---------------------------------------------------------------------------
# Fused kernel (AttnNodeFlag == True)
# ---------------------------------------------------------------------------
def _edge_gcn_attn_kernel(idx_ref, efT_ref, rsn_ref, ron_ref, b_red_ref,
                          w1_ref, b1_ref, w2_ref, b2_ref,
                          w_lin_ref, b_lin_ref, oT_ref):
    n_nodes = rsn_ref.shape[1]
    te = efT_ref.shape[1]

    # Per-edge gather fused with node_indicator_reduction:
    #   rsn = w_red[:, :C_h] @ relu(W_attn @ nodeT + b)   (hoisted, resident)
    #   ron = w_red[:, C_h:] @ relu(W_attn @ nodeT + b)
    #   agg = sigmoid(rsn @ onehot(subj) + ron @ onehot(obj) + b_red)
    idx = idx_ref[...]                                             # (2, TE) i32
    iota = jax.lax.broadcasted_iota(jnp.int32, (n_nodes, te), 0)
    sel_s = (iota == idx[0:1, :]).astype(_BF16)                    # (N, TE)
    sel_o = (iota == idx[1:2, :]).astype(_BF16)                    # (N, TE)
    agg_pre = (jnp.dot(rsn_ref[...], sel_s, preferred_element_type=_F32)
               + jnp.dot(ron_ref[...], sel_o, preferred_element_type=_F32)
               + b_red_ref[...])
    agg = jax.nn.sigmoid(agg_pre)                                  # (C_h, TE) f32

    # edge_MLP1 + ReLU  (bf16 MXU, f32 accumulate, f32 elementwise)
    h1 = jnp.maximum(
        jnp.dot(w1_ref[...], efT_ref[...], preferred_element_type=_F32)
        + b1_ref[...], 0.0)

    h = h1 * agg                                                   # eval dropout = id

    # edge_MLP2 + ReLU
    h2 = jnp.maximum(
        jnp.dot(w2_ref[...], h.astype(_BF16), preferred_element_type=_F32)
        + b2_ref[...], 0.0)

    # final Linear + ReLU
    out = jnp.maximum(
        jnp.dot(w_lin_ref[...], h2.astype(_BF16), preferred_element_type=_F32)
        + b_lin_ref[...], 0.0)
    oT_ref[...] = out.astype(oT_ref.dtype)


# ---------------------------------------------------------------------------
# Fused kernel (AttnNodeFlag == False  ->  agg_node_indicator == 1)
# ---------------------------------------------------------------------------
def _edge_gcn_noattn_kernel(efT_ref, w1_ref, b1_ref, w2_ref, b2_ref,
                            w_lin_ref, b_lin_ref, oT_ref):
    h1 = jnp.maximum(
        jnp.dot(w1_ref[...], efT_ref[...], preferred_element_type=_F32)
        + b1_ref[...], 0.0)
    h2 = jnp.maximum(
        jnp.dot(w2_ref[...], h1.astype(_BF16), preferred_element_type=_F32)
        + b2_ref[...], 0.0)
    out = jnp.maximum(
        jnp.dot(w_lin_ref[...], h2.astype(_BF16), preferred_element_type=_F32)
        + b_lin_ref[...], 0.0)
    oT_ref[...] = out.astype(oT_ref.dtype)


# ---------------------------------------------------------------------------
# Tiling: budget-derived lane tile, decoupled from e_pad.
# ---------------------------------------------------------------------------
def _prefer_multicore_grid():
    # v7x has 2 TensorCores per chip; feed both via a parallel grid axis.
    try:
        kind = jax.devices()[0].device_kind.lower()
        return "v7" in kind
    except Exception:  # pragma: no cover - heuristic only
        return False


def _choose_tiling(E, bytes_per_lane, resident_bytes, multi_core):
    e128 = _round_up(max(int(E), 1), 128)
    blocks = e128 // 128
    # Keep lane-scaled VMEM (double buffers + intermediates) within ~24 MiB
    # minus residents; safe on v7x (64 MiB phys / 32 MiB scoped) and well
    # inside v5e/v6e.  Cap at 8192 lanes.
    budget = max(2 * 1024 * 1024, 24 * 1024 * 1024 - int(resident_bytes))
    cap_blocks = max(1, min(64, budget // (max(int(bytes_per_lane), 1) * 128)))
    n_tiles = _cdiv(blocks, cap_blocks)
    if multi_core and n_tiles == 1 and blocks >= 8:
        n_tiles = 2                       # give both v7x TensorCores work
    tile_blocks = _cdiv(blocks, n_tiles)
    tile_e = tile_blocks * 128
    e_pad = n_tiles * tile_e              # at most (n_tiles-1)*128 wasted lanes
    return tile_e, e_pad


# ---------------------------------------------------------------------------
# Wrapper: full forward (eval mode).  Returns (E, hidden) like the PyTorch module.
# ---------------------------------------------------------------------------
def edge_gcn_encoder_forward(node_feats, edge_index, edge_feats, params,
                             attn_node_flag=True, tile_e=None):
    E, c_edge = edge_feats.shape
    hidden = params["w_lin"].shape[0]
    c_half = params["w1"].shape[0]
    attn = bool(attn_node_flag) and node_feats is not None
    n_nodes = int(node_feats.shape[0]) if attn else 1

    # ---- VMEM byte estimate per lane (for tile sizing) ----------------------
    bpl = (2 * c_edge * 2                 # ef bf16, double-buffered
           + 2 * hidden * 4               # out f32, double-buffered
           + (2 * c_edge + 6 * c_half + 2 * hidden) * 4)   # f32/bf16 temporaries
    resident = 2 * (c_half * c_edge + c_edge * c_half + hidden * c_edge) \
        + 4 * (2 * c_half + c_edge + hidden)
    if attn:
        bpl += 2 * 8 * 4                  # idx i32 (8-sublane padded), dbl-buffered
        bpl += 2 * n_nodes * 2            # bf16 one-hot masks
        resident += 2 * c_half * n_nodes * 2   # folded node tables (bf16)

    if tile_e is None:
        tile_e, e_pad = _choose_tiling(E, bpl, resident, _prefer_multicore_grid())
    else:
        tile_e = max(128, _round_up(int(tile_e), 128))
        e_pad = _round_up(E, tile_e)
    grid = (e_pad // tile_e,)

    # ---- wrapper-side layout plumbing + grid-invariant hoists ---------------
    ef_T = jnp.pad(edge_feats.astype(_BF16), ((0, e_pad - E), (0, 0))).T

    col = lambda b: b.reshape(-1, 1).astype(_F32)
    b1_c, b2_c, b_lin_c = col(params["b1"]), col(params["b2"]), col(params["b_lin"])
    w1_b = params["w1"].astype(_BF16)
    w2_b = params["w2"].astype(_BF16)
    w_lin_b = params["w_lin"].astype(_BF16)

    full = lambda a: pl.BlockSpec(a.shape, lambda i: (0,) * a.ndim)
    lane_tiled = lambda rows: pl.BlockSpec((rows, tile_e), lambda i: (0, i))
    cparams = pltpu.CompilerParams(dimension_semantics=("parallel",),
                                   vmem_limit_bytes=32 * 1024 * 1024)

    if attn:
        # Hoisted node attention (grid-invariant):  (C_half, N)
        nf_T = node_feats.astype(_F32).T
        node_ind_T = jnp.maximum(
            params["w_attn"].astype(_F32) @ nf_T
            + params["b_attn"].astype(_F32)[:, None], 0.0)
        # Fold node_indicator_reduction weights into the resident node tables.
        w_red = params["w_red"].astype(_F32)
        rsn = (w_red[:, :c_half] @ node_ind_T).astype(_BF16)       # (C_half, N)
        ron = (w_red[:, c_half:] @ node_ind_T).astype(_BF16)       # (C_half, N)
        b_red_c = col(params["b_red"])

        idx = jnp.pad(edge_index.astype(jnp.int32),
                      ((0, 0), (0, e_pad - E)))                    # pad -> node 0

        out_T = pl.pallas_call(
            _edge_gcn_attn_kernel,
            out_shape=jax.ShapeDtypeStruct((hidden, e_pad), _F32),
            grid_spec=pltpu.PrefetchScalarGridSpec(
                num_scalar_prefetch=0,
                grid=grid,
                in_specs=[
                    lane_tiled(2),                   # edge_index   (2, tile)
                    lane_tiled(c_edge),              # edge feats   (C_edge, tile) bf16
                    full(rsn), full(ron), full(b_red_c),
                    full(w1_b), full(b1_c),
                    full(w2_b), full(b2_c),
                    full(w_lin_b), full(b_lin_c),
                ],
                out_specs=lane_tiled(hidden),
            ),
            compiler_params=cparams,
        )(idx, ef_T, rsn, ron, b_red_c,
          w1_b, b1_c, w2_b, b2_c, w_lin_b, b_lin_c)
    else:
        out_T = pl.pallas_call(
            _edge_gcn_noattn_kernel,
            out_shape=jax.ShapeDtypeStruct((hidden, e_pad), _F32),
            grid_spec=pltpu.PrefetchScalarGridSpec(
                num_scalar_prefetch=0,
                grid=grid,
                in_specs=[
                    lane_tiled(c_edge),
                    full(w1_b), full(b1_c),
                    full(w2_b), full(b2_c),
                    full(w_lin_b), full(b_lin_c),
                ],
                out_specs=lane_tiled(hidden),
            ),
            compiler_params=cparams,
        )(ef_T, w1_b, b1_c, w2_b, b2_c, w_lin_b, b_lin_c)

    return out_T[:, :E].T                                          # (E, hidden)


# ---------------------------------------------------------------------------
# Pure-JAX f32 reference (mirrors the PyTorch forward, eval mode)
# ---------------------------------------------------------------------------
def _reference_forward(node_feats, edge_index, edge_feats, params,
                       attn_node_flag=True):
    ef = edge_feats.astype(_F32)
    if attn_node_flag and node_feats is not None:
        ni = jax.nn.relu(node_feats.astype(_F32) @ params["w_attn"].astype(_F32).T
                         + params["b_attn"].astype(_F32))
        cat = jnp.concatenate([ni[edge_index[0]], ni[edge_index[1]]], axis=1)
        agg = jax.nn.sigmoid(cat @ params["w_red"].astype(_F32).T
                             + params["b_red"].astype(_F32))
    else:
        agg = 1.0
    h1 = jax.nn.relu(ef @ params["w1"].astype(_F32).T + params["b1"].astype(_F32))
    h = h1 * agg
    h2 = jax.nn.relu(h @ params["w2"].astype(_F32).T + params["b2"].astype(_F32))
    return jax.nn.relu(h2 @ params["w_lin"].astype(_F32).T
                       + params["b_lin"].astype(_F32))


# ---------------------------------------------------------------------------
# Deterministic parameter construction (PyTorch shapes: weight = (out, in))
# ---------------------------------------------------------------------------
def make_params(key, num_node_in, num_edge_in, hidden_dim):
    c_half = num_edge_in // 2
    ks = jax.random.split(key, 10)
    u = lambda k, shape, fan_in: jax.random.uniform(
        k, shape, _F32, -1.0, 1.0) / jnp.sqrt(jnp.float32(fan_in))
    return {
        "w1": u(ks[0], (c_half, num_edge_in), num_edge_in),        # Conv1d k=1
        "b1": u(ks[1], (c_half,), num_edge_in),
        "w2": u(ks[2], (num_edge_in, c_half), c_half),             # Conv1d k=1
        "b2": u(ks[3], (num_edge_in,), c_half),
        "w_lin": u(ks[4], (hidden_dim, num_edge_in), num_edge_in), # Linear
        "b_lin": u(ks[5], (hidden_dim,), num_edge_in),
        "w_attn": u(ks[6], (c_half, num_node_in), num_node_in),    # node_attentionND
        "b_attn": u(ks[7], (c_half,), num_node_in),
        "w_red": u(ks[8], (c_half, 2 * c_half), 2 * c_half),       # indicator reduction
        "b_red": u(ks[9], (c_half,), 2 * c_half),
    }


if __name__ == "__main__":
    num_node_in = 32
    num_edge_in = 32
    hidden_dim = 32
    N = 16       # nodes
    E = 256      # edges

    key = jax.random.PRNGKey(0)
    k_node, k_edge, k_idx, k_par = jax.random.split(key, 4)

    node_feats = jax.random.normal(k_node, (N, num_node_in), _F32)
    edge_feats = jax.random.normal(k_edge, (E, num_edge_in), _F32)
    edge_index = jax.random.randint(k_idx, (2, E), 0, N, jnp.int32)
    params = make_params(k_par, num_node_in, num_edge_in, hidden_dim)

    # AttnNodeFlag = True path (fused gather + reduction + edge MLPs + Linear)
    out = edge_gcn_encoder_forward(node_feats, edge_index, edge_feats, params,
                                   attn_node_flag=True)
    out = jax.block_until_ready(out)
    ref = _reference_forward(node_feats, edge_index, edge_feats, params, True)
    assert out.shape == (E, hidden_dim)
    assert bool(jnp.all(jnp.isfinite(out)))
    err = float(jnp.max(jnp.abs(out - ref)))
    scale = float(jnp.max(jnp.abs(ref)))
    assert err <= 0.1 * scale + 1e-3, f"attn path mismatch: err={err}, scale={scale}"

    # AttnNodeFlag = False path (agg_node_indicator == 1)
    out2 = edge_gcn_encoder_forward(None, None, edge_feats, params,
                                    attn_node_flag=False)
    out2 = jax.block_until_ready(out2)
    ref2 = _reference_forward(None, None, edge_feats, params, False)
    assert out2.shape == (E, hidden_dim)
    assert bool(jnp.all(jnp.isfinite(out2)))
    err2 = float(jnp.max(jnp.abs(out2 - ref2)))
    scale2 = float(jnp.max(jnp.abs(ref2)))
    assert err2 <= 0.1 * scale2 + 1e-3, f"no-attn path mismatch: err={err2}"

    print("KERNEL_OK")
</pallas_src>

<mosaic_0001>
module attributes {stable_mosaic.version = 11 : i64} {
  func.func @_edge_gcn_attn_kernel(%arg0: i32, %arg1: memref<2x256xi32, #tpu.memory_space<vmem>>, %arg2: memref<32x256xbf16, #tpu.memory_space<vmem>>, %arg3: memref<16x16xbf16, #tpu.memory_space<vmem>>, %arg4: memref<16x16xbf16, #tpu.memory_space<vmem>>, %arg5: memref<16x1xf32, #tpu.memory_space<vmem>>, %arg6: memref<16x32xbf16, #tpu.memory_space<vmem>>, %arg7: memref<16x1xf32, #tpu.memory_space<vmem>>, %arg8: memref<32x16xbf16, #tpu.memory_space<vmem>>, %arg9: memref<32x1xf32, #tpu.memory_space<vmem>>, %arg10: memref<32x32xbf16, #tpu.memory_space<vmem>>, %arg11: memref<32x1xf32, #tpu.memory_space<vmem>>, %arg12: memref<32x256xf32, #tpu.memory_space<vmem>>) attributes {dimension_semantics = [#tpu.dimension_semantics<parallel>], iteration_bounds = array<i64: 1>, scalar_prefetch = 0 : i64, scratch_operands = 0 : i64, tpu.core_type = #tpu.core_type<tc>, window_params = [{transform_indices = @transform_0, window_bounds = array<i64: 2, 256>}, {transform_indices = @transform_1, window_bounds = array<i64: 32, 256>}, {pipeline_mode = #tpu.pipeline_mode<synchronous>, transform_indices = @transform_2, window_bounds = array<i64: 16, 16>}, {pipeline_mode = #tpu.pipeline_mode<synchronous>, transform_indices = @transform_3, window_bounds = array<i64: 16, 16>}, {pipeline_mode = #tpu.pipeline_mode<synchronous>, transform_indices = @transform_4, window_bounds = array<i64: 16, 1>}, {pipeline_mode = #tpu.pipeline_mode<synchronous>, transform_indices = @transform_5, window_bounds = array<i64: 16, 32>}, {pipeline_mode = #tpu.pipeline_mode<synchronous>, transform_indices = @transform_6, window_bounds = array<i64: 16, 1>}, {pipeline_mode = #tpu.pipeline_mode<synchronous>, transform_indices = @transform_7, window_bounds = array<i64: 32, 16>}, {pipeline_mode = #tpu.pipeline_mode<synchronous>, transform_indices = @transform_8, window_bounds = array<i64: 32, 1>}, {pipeline_mode = #tpu.pipeline_mode<synchronous>, transform_indices = @transform_9, window_bounds = array<i64: 32, 32>}, {pipeline_mode = #tpu.pipeline_mode<synchronous>, transform_indices = @transform_10, window_bounds = array<i64: 32, 1>}, {transform_indices = @transform_11, window_bounds = array<i64: 32, 256>}]} {
    %c0 = arith.constant 0 : index
    %c0_0 = arith.constant 0 : index
    %0 = vector.load %arg1[%c0, %c0_0] : memref<2x256xi32, #tpu.memory_space<vmem>>, vector<2x256xi32>
    %1 = tpu.iota {dimensions = array<i32: 0>} : vector<16x256xi32>
    %2 = vector.extract_strided_slice %0 {offsets = [0, 0], sizes = [1, 256], strides = [1, 1]} : vector<2x256xi32> to vector<1x256xi32>
    %3 = vector.broadcast %2 : vector<1x256xi32> to vector<16x256xi32>
    %4 = arith.cmpi eq, %1, %3 : vector<16x256xi32>
    %5 = arith.extui %4 : vector<16x256xi1> to vector<16x256xi32>
    %6 = arith.sitofp %5 : vector<16x256xi32> to vector<16x256xf32>
    %7 = arith.truncf %6 : vector<16x256xf32> to vector<16x256xbf16>
    %8 = vector.extract_strided_slice %0 {offsets = [1, 0], sizes = [1, 256], strides = [1, 1]} : vector<2x256xi32> to vector<1x256xi32>
    %9 = vector.broadcast %8 : vector<1x256xi32> to vector<16x256xi32>
    %10 = arith.cmpi eq, %1, %9 : vector<16x256xi32>
    %11 = arith.extui %10 : vector<16x256xi1> to vector<16x256xi32>
    %12 = arith.sitofp %11 : vector<16x256xi32> to vector<16x256xf32>
    %13 = arith.truncf %12 : vector<16x256xf32> to vector<16x256xbf16>
    %c0_1 = arith.constant 0 : index
    %c0_2 = arith.constant 0 : index
    %14 = vector.load %arg3[%c0_1, %c0_2] : memref<16x16xbf16, #tpu.memory_space<vmem>>, vector<16x16xbf16>
    %cst = arith.constant dense<0.000000e+00> : vector<16x256xf32>
    %15 = tpu.matmul %14, %7, %cst {dimension_numbers = #tpu.dot_dimension_numbers<[1], [0], [0], [1], [0, 0, 1, 1], [], []>} : vector<16x16xbf16>, vector<16x256xbf16>, vector<16x256xf32> -> vector<16x256xf32>
    %c0_3 = arith.constant 0 : index
    %c0_4 = arith.constant 0 : index
    %16 = vector.load %arg4[%c0_3, %c0_4] : memref<16x16xbf16, #tpu.memory_space<vmem>>, vector<16x16xbf16>
    %cst_5 = arith.constant dense<0.000000e+00> : vector<16x256xf32>
    %17 = tpu.matmul %16, %13, %cst_5 {dimension_numbers = #tpu.dot_dimension_numbers<[1], [0], [0], [1], [0, 0, 1, 1], [], []>} : vector<16x16xbf16>, vector<16x256xbf16>, vector<16x256xf32> -> vector<16x256xf32>
    %18 = arith.addf %15, %17 : vector<16x256xf32>
    %c0_6 = arith.constant 0 : index
    %c0_7 = arith.constant 0 : index
    %19 = vector.load %arg5[%c0_6, %c0_7] : memref<16x1xf32, #tpu.memory_space<vmem>>, vector<16x1xf32>
    %20 = vector.broadcast %19 : vector<16x1xf32> to vector<16x256xf32>
    %21 = arith.addf %18, %20 : vector<16x256xf32>
    %22 = arith.negf %21 : vector<16x256xf32>
    %23 = math.exp %22 : vector<16x256xf32>
    %cst_8 = arith.constant 1.000000e+00 : f32
    %24 = vector.broadcast %cst_8 : f32 to vector<16x256xf32>
    %25 = arith.addf %24, %23 : vector<16x256xf32>
    %26 = arith.divf %24, %25 : vector<16x256xf32>
    %c0_9 = arith.constant 0 : index
    %c0_10 = arith.constant 0 : index
    %27 = vector.load %arg6[%c0_9, %c0_10] : memref<16x32xbf16, #tpu.memory_space<vmem>>, vector<16x32xbf16>
    %c0_11 = arith.constant 0 : index
    %c0_12 = arith.constant 0 : index
    %28 = vector.load %arg2[%c0_11, %c0_12] : memref<32x256xbf16, #tpu.memory_space<vmem>>, vector<32x256xbf16>
    %cst_13 = arith.constant dense<0.000000e+00> : vector<16x256xf32>
    %29 = tpu.matmul %27, %28, %cst_13 {dimension_numbers = #tpu.dot_dimension_numbers<[1], [0], [0], [1], [0, 0, 1, 1], [], []>} : vector<16x32xbf16>, vector<32x256xbf16>, vector<16x256xf32> -> vector<16x256xf32>
    %c0_14 = arith.constant 0 : index
    %c0_15 = arith.constant 0 : index
    %30 = vector.load %arg7[%c0_14, %c0_15] : memref<16x1xf32, #tpu.memory_space<vmem>>, vector<16x1xf32>
    %31 = vector.broadcast %30 : vector<16x1xf32> to vector<16x256xf32>
    %32 = arith.addf %29, %31 : vector<16x256xf32>
    %cst_16 = arith.constant 0.000000e+00 : f32
    %33 = vector.broadcast %cst_16 : f32 to vector<16x256xf32>
    %34 = arith.maximumf %32, %33 : vector<16x256xf32>
    %35 = arith.mulf %34, %26 : vector<16x256xf32>
    %c0_17 = arith.constant 0 : index
    %c0_18 = arith.constant 0 : index
    %36 = vector.load %arg8[%c0_17, %c0_18] : memref<32x16xbf16, #tpu.memory_space<vmem>>, vector<32x16xbf16>
    %37 = arith.truncf %35 : vector<16x256xf32> to vector<16x256xbf16>
    %cst_19 = arith.constant dense<0.000000e+00> : vector<32x256xf32>
    %38 = tpu.matmul %36, %37, %cst_19 {dimension_numbers = #tpu.dot_dimension_numbers<[1], [0], [0], [1], [0, 0, 1, 1], [], []>} : vector<32x16xbf16>, vector<16x256xbf16>, vector<32x256xf32> -> vector<32x256xf32>
    %c0_20 = arith.constant 0 : index
    %c0_21 = arith.constant 0 : index
    %39 = vector.load %arg9[%c0_20, %c0_21] : memref<32x1xf32, #tpu.memory_space<vmem>>, vector<32x1xf32>
    %40 = vector.broadcast %39 : vector<32x1xf32> to vector<32x256xf32>
    %41 = arith.addf %38, %40 : vector<32x256xf32>
    %cst_22 = arith.constant 0.000000e+00 : f32
    %42 = vector.broadcast %cst_22 : f32 to vector<32x256xf32>
    %43 = arith.maximumf %41, %42 : vector<32x256xf32>
    %c0_23 = arith.constant 0 : index
    %c0_24 = arith.constant 0 : index
    %44 = vector.load %arg10[%c0_23, %c0_24] : memref<32x32xbf16, #tpu.memory_space<vmem>>, vector<32x32xbf16>
    %45 = arith.truncf %43 : vector<32x256xf32> to vector<32x256xbf16>
    %cst_25 = arith.constant dense<0.000000e+00> : vector<32x256xf32>
    %46 = tpu.matmul %44, %45, %cst_25 {dimension_numbers = #tpu.dot_dimension_numbers<[1], [0], [0], [1], [0, 0, 1, 1], [], []>} : vector<32x32xbf16>, vector<32x256xbf16>, vector<32x256xf32> -> vector<32x256xf32>
    %c0_26 = arith.constant 0 : index
    %c0_27 = arith.constant 0 : index
    %47 = vector.load %arg11[%c0_26, %c0_27] : memref<32x1xf32, #tpu.memory_space<vmem>>, vector<32x1xf32>
    %48 = vector.broadcast %47 : vector<32x1xf32> to vector<32x256xf32>
    %49 = arith.addf %46, %48 : vector<32x256xf32>
    %cst_28 = arith.constant 0.000000e+00 : f32
    %50 = vector.broadcast %cst_28 : f32 to vector<32x256xf32>
    %51 = arith.maximumf %49, %50 : vector<32x256xf32>
    %c0_29 = arith.constant 0 : index
    %c0_30 = arith.constant 0 : index
    %52 = vector.load %arg12[%c0_29, %c0_30] : memref<32x256xf32, #tpu.memory_space<vmem>>, vector<32x256xf32>
    tpu.vector_store %arg12[%c0_29, %c0_30], %51 {strides = array<i32>} : memref<32x256xf32, #tpu.memory_space<vmem>>, vector<32x256xf32>,
    return
  }
  func.func @transform_0(%arg0: i32) -> (i32, i32) {
    %c0_i32 = arith.constant 0 : i32
    %c0_i32_0 = arith.constant 0 : i32
    return %c0_i32, %arg0 : i32, i32
  }
  func.func @transform_1(%arg0: i32) -> (i32, i32) {
    %c0_i32 = arith.constant 0 : i32
    %c0_i32_0 = arith.constant 0 : i32
    return %c0_i32, %arg0 : i32, i32
  }
  func.func @transform_2(%arg0: i32) -> (i32, i32) {
    %c0_i32 = arith.constant 0 : i32
    %c0_i32_0 = arith.constant 0 : i32
    %c0_i32_1 = arith.constant 0 : i32
    return %c0_i32, %c0_i32_0 : i32, i32
  }
  func.func @transform_3(%arg0: i32) -> (i32, i32) {
    %c0_i32 = arith.constant 0 : i32
    %c0_i32_0 = arith.constant 0 : i32
    %c0_i32_1 = arith.constant 0 : i32
    return %c0_i32, %c0_i32_0 : i32, i32
  }
  func.func @transform_4(%arg0: i32) -> (i32, i32) {
    %c0_i32 = arith.constant 0 : i32
    %c0_i32_0 = arith.constant 0 : i32
    %c0_i32_1 = arith.constant 0 : i32
    return %c0_i32, %c0_i32_0 : i32, i32
  }
  func.func @transform_5(%arg0: i32) -> (i32, i32) {
    %c0_i32 = arith.constant 0 : i32
    %c0_i32_0 = arith.constant 0 : i32
    %c0_i32_1 = arith.constant 0 : i32
    return %c0_i32, %c0_i32_0 : i32, i32
  }
  func.func @transform_6(%arg0: i32) -> (i32, i32) {
    %c0_i32 = arith.constant 0 : i32
    %c0_i32_0 = arith.constant 0 : i32
    %c0_i32_1 = arith.constant 0 : i32
    return %c0_i32, %c0_i32_0 : i32, i32
  }
  func.func @transform_7(%arg0: i32) -> (i32, i32) {
    %c0_i32 = arith.constant 0 : i32
    %c0_i32_0 = arith.constant 0 : i32
    %c0_i32_1 = arith.constant 0 : i32
    return %c0_i32, %c0_i32_0 : i32, i32
  }
  func.func @transform_8(%arg0: i32) -> (i32, i32) {
    %c0_i32 = arith.constant 0 : i32
    %c0_i32_0 = arith.constant 0 : i32
    %c0_i32_1 = arith.constant 0 : i32
    return %c0_i32, %c0_i32_0 : i32, i32
  }
  func.func @transform_9(%arg0: i32) -> (i32, i32) {
    %c0_i32 = arith.constant 0 : i32
    %c0_i32_0 = arith.constant 0 : i32
    %c0_i32_1 = arith.constant 0 : i32
    return %c0_i32, %c0_i32_0 : i32, i32
  }
  func.func @transform_10(%arg0: i32) -> (i32, i32) {
    %c0_i32 = arith.constant 0 : i32
    %c0_i32_0 = arith.constant 0 : i32
    %c0_i32_1 = arith.constant 0 : i32
    return %c0_i32, %c0_i32_0 : i32, i32
  }
  func.func @transform_11(%arg0: i32) -> (i32, i32) {
    %c0_i32 = arith.constant 0 : i32
    %c0_i32_0 = arith.constant 0 : i32
    return %c0_i32, %arg0 : i32, i32
  }
}

</mosaic_0001>

<bundles_post_ra>
// kernel: tpu_custom_call.1
= control target key start
LH: loop header
LB: loop body
LE: loop exit
PB: predicated region body
PF: predicated region fallthrough
CT: control target
= control target key end

     0   :  { %v41_v0 = vlaneseq  ;;  %v691_v2 = vmov 0   ;;  %vm294_vm0 = vcmask 261120   ;;  %v692_v28 = vmov 1.0|1.0   ;;  %s856_s0 = inlined_call_operand.vmem [shape: s32[2,256], index: 0, kind: input, shape index: {}]   ;;  %s857_s1 = inlined_call_operand.vmem [shape: bf16[32,256], index: 1, kind: input, shape index: {}]   ;;  %s858_s2 = inlined_call_operand.vmem [shape: bf16[16,16], index: 2, kind: input, shape index: {}]   ;;  %s859_s3 = inlined_call_operand.vmem [shape: bf16[16,16], index: 3, kind: input, shape index: {}]   ;;  %s860_s4 = inlined_call_operand.vmem [shape: f32[16,1], index: 4, kind: input, shape index: {}]   ;;  %s861_s5 = inlined_call_operand.vmem [shape: bf16[16,32], index: 5, kind: input, shape index: {}]   ;;  %s862_s6 = inlined_call_operand.vmem [shape: f32[16,1], index: 6, kind: input, shape index: {}]   ;;  %s863_s7 = inlined_call_operand.vmem [shape: bf16[32,16], index: 7, kind: input, shape index: {}]   ;;  %s864_s8 = inlined_call_operand.vmem [shape: f32[32,1], index: 8, kind: input, shape index: {}]   ;;  %s865_s9 = inlined_call_operand.vmem [shape: bf16[32,32], index: 9, kind: input, shape index: {}]   ;;  %s866_s10 = inlined_call_operand.vmem [shape: f32[32,1], index: 10, kind: input, shape index: {}]   ;;  %s867_s11 = inlined_call_operand.hbm [shape: f32[32,256], index: 11, kind: output, shape index: {}]  }
   0x1   :  { %v40_v1 = vld [vmem:[%s856_s0] sm:$0xf]  ;;  %149 = vmatprep.mubr.bf16.mxu0 %v691_v2  ;;  %330 = vmatprep.mubr.bf16.mxu1 %v691_v2  ;;  %v640_v4 = vld [vmem:[%s857_s1 + $0x4] ss:$8 sps:$4 sm:$0xff]   ;;  %v643_v10 = vld [vmem:[%s857_s1 + $0x14] ss:$8 sps:$4 sm:$0xff]  }
   0x2   :  { %v42_v3 = vshrl.u32 %v41_v0, 7  ;;  %636 = vset.pattern.permute.xlu0 %v691_v2  ;;  %637 = vset.pattern.permute.xlu1 %v691_v2  ;;  %v642_v5 = vld [vmem:[%s857_s1] ss:$8 sps:$4 sm:$0xff]   ;;  %v645_v11 = vld [vmem:[%s857_s1 + $0x10] ss:$8 sps:$4 sm:$0xff]   ;;  %vm113_vm11 = vcmask 130048  }
   0x3   :  { %298 = vmatprep.subr.bf16.mxu1 %v640_v4  ;;  %v211_v16 = vld [vmem:[%s860_s4] sm:$0xff]  ;;  %v212_v21 = vld [vmem:[%s860_s4 + $0x8] sm:$0xff] }
   0x4   :  { %v76_v6 = vsub.s32 1, %v42_v3  ;;  %v80_v7 = vsub.s32 3, %v42_v3  ;;  %v46_v8 = vsub.s32 0, %v42_v3  ;;  %v50_v9 = vsub.s32 2, %v42_v3  ;;  %299 = vmatpush1.bf16.msra.mxu1 %v642_v5  ;;  %215 = vperm.xlu0 %636, %v211_v16   ;;  %v257_v22 = vld [vmem:[%s862_s6] sm:$0xff]  ;;  %v258_v27 = vld [vmem:[%s862_s6 + $0x8] sm:$0xff] }
   0x5   :  { %v43_v12 = vadd.s32 8, %v42_v3  ;;  %300 = vmatprep.subr.bf16.mxu1 %v643_v10  ;;  %v646_v24 = vld [vmem:[%s861_s5] sm:$0xff]   ;;  %261 = vperm.xlu1 %637, %v257_v22   ;;  %v356_v29 = vld [vmem:[%s864_s8 + $0x8] sm:$0xff] }
   0x6   :  { %v81_v13 = vrot.slane %v40_v1, %v80_v7  ;;  %v77_v14 = vrot.slane %v40_v1, %v76_v6  ;;  %v47_v15 = vrot.slane %v40_v1, %v46_v8  ;;  %v51_v17 = vrot.slane %v40_v1, %v50_v9  ;;  %v638_v25 = vld [vmem:[%s859_s3] sm:$0xff]  }
   0x7   :  { %v355_v26 = vld [vmem:[%s864_s8] sm:$0xff] }
   0x8   :  { %v89_v18 = vrot.slane %v81_v13, %v76_v6  ;;  %v85_v19 = vrot.slane %v77_v14, %v76_v6  ;;  %v55_v20 = vrot.slane %v47_v15, %v46_v8  ;;  %v59_v23 = vrot.slane %v51_v17, %v46_v8  ;;  %301 = vmatpush1.bf16.msra.mxu1 %v645_v11 }
   0x9   :  { %220 = vperm.xlu0 %636, %v212_v21   ;;  %266 = vperm.xlu1 %637, %v258_v27  }
   0xa   :  { %vm91_vm1 = vcmp.eq.s32.totalorder %v42_v3, %v89_v18  ;;  %vm93_vm2 = vcmp.eq.s32.totalorder %v43_v12, %v89_v18  ;;  %vm90_vm3 = vcmp.eq.s32.totalorder %v42_v3, %v85_v19  ;;  %vm92_vm4 = vcmp.eq.s32.totalorder %v43_v12, %v85_v19 }
   0xb   :  { %vm598_vm5 = vmpackc.low %vm93_vm2, %vm91_vm1  ;;  %vm61_vm6 = vcmp.eq.s32.totalorder %v42_v3, %v59_v23  ;;  %vm63_vm7 = vcmp.eq.s32.totalorder %v43_v12, %v59_v23  ;;  %vm60_vm8 = vcmp.eq.s32.totalorder %v42_v3, %v55_v20  ;;  %vm62_vm9 = vcmp.eq.s32.totalorder %v43_v12, %v55_v20  ;;  %618 = vmatmul.mubr.msk.bf16.vlgmr.msra.gmra.mrb[0].mxu1 %vm294_vm0, %v646_v24 }
   0xc   :  { %599 = vmatprep.subr.msk.bf16.mxu0 %vm598_vm5, %v692_v28  ;;  %vm600_vm10 = vmpackc.low %vm92_vm4, %vm90_vm3  ;;  %427 = vmatprep.mubr.bf16.mxu1 %v691_v2 }
   0xd   :  { %601 = vmatpush1.bf16.msk.msra.mxu0 %vm600_vm10, %v692_v28  ;;  %vm604_vm12 = vmpackc.low %vm63_vm7, %vm61_vm6  ;;  %361 = vperm.xlu0 %636, %v355_v26  }
   0xe   :  { %605 = vmatprep.subr.msk.bf16.mxu0 %vm604_vm12, %v692_v28  ;;  %vm606_vm13 = vmpackc.low %vm62_vm9, %vm60_vm8 }
   0xf   :  { %16 = vsyncpa [#allocation3], 0  ;;  %v357_v30 = vld [vmem:[%s864_s8 + $0x10] sm:$0xff]  ;;  %366 = vperm.xlu1 %637, %v356_v29   ;;  %v358_v31 = vld [vmem:[%s864_s8 + $0x18] sm:$0xff] }
  0x10   :  { %602 = vmatmul.mubr.msk.bf16.vlgmr.msra.gmra.mrb[0].mxu0 %vm113_vm11, %v638_v25  ;;  %v464_v32 = vld [vmem:[%s866_s10] sm:$0xff]  ;;  %v465_v33 = vld [vmem:[%s866_s10 + $0x8] sm:$0xff]  ;;  %v466_v35 = vld [vmem:[%s866_s10 + $0x10] sm:$0xff] }
  0x11   :  { %607 = vmatpush1.bf16.msk.msra.mxu0 %vm606_vm13, %v692_v28  ;;  %200 = vmatprep.mubr.bf16.mxu0 %v691_v2  ;;  %v639_v34 = vld [vmem:[%s858_s2] sm:$0xff]   ;;  %v467_v36 = vld [vmem:[%s866_s10 + $0x18] sm:$0xff]  ;;  %v648_v21 = vld [vmem:[%s863_s7 + $0x8] sm:$0xff]  }
  0x12   :  { %371 = vperm.xlu0 %636, %v357_v30   ;;  %v647_v20 = vld [vmem:[%s863_s7] sm:$0xff]  }
  0x13   :  { %376 = vperm.xlu1 %637, %v358_v31  }
  0x16   :  { %470 = vperm.xlu0 %636, %v464_v32  }
  0x17   :  { %475 = vperm.xlu1 %637, %v465_v33  }
  0x1a   :  { %480 = vperm.xlu0 %636, %v466_v35  }
  0x1b   :  { %485 = vperm.xlu1 %637, %v467_v36  }
  0x1c   :  { %608 = vmatmul.mubr.msk.bf16.vlgmr.msra.gmra.mrb[0].mxu0 %vm113_vm11, %v639_v34 }
  0x1d   :  { %536 = vmatprep.mubr.bf16.mxu0 %v691_v2 }
  0x83   :  { %v216_v41 = vpop.permute.xlu0 %215 }
  0x84   :  { %v262_v62 = vpop.permute.xlu1 %261 }
  0x88   :  { %v221_v45 = vpop.permute.xlu0 %220  ;;  %v267_v1 = vpop.permute.xlu1 %266 }
  0x8c   :  { %v362_v22 = vpop.permute.xlu0 %361 }
  0x8e   :  { %v367_v26 = vpop.permute.xlu1 %366 }
  0xde   :  { %v332_v37 = vpop.f32.mrb[0].mxu1 }
  0xdf   :  { %v334_v38 = vpop.f32.mrb[1].mxu1  ;;  %v333_v0 = vadd.f32 %v332_v37, %v262_v62  ;;  %v372_v37 = vpop.permute.xlu0 %371 }
  0xe0   :  { %v336_v39 = vpop.f32.mrb[2].mxu1  ;;  %v335_v3 = vadd.f32 %v334_v38, %v262_v62 }
  0xe1   :  { %v338_v40 = vpop.f32.mrb[3].mxu1  ;;  %v341_v4 = vmax.f32 %v333_v0, 0.0  ;;  %v337_v5 = vadd.f32 %v336_v39, %v267_v1 }
  0xe2   :  { %v339_v6 = vadd.f32 %v338_v40, %v267_v1  ;;  %v342_v8 = vmax.f32 %v335_v3, 0.0 }
  0xe3   :  { %v343_v11 = vmax.f32 %v337_v5, 0.0 }
  0xe4   :  { %v344_v14 = vmax.f32 %v339_v6, 0.0 }
  0xef   :  { %v202_v42 = vpop.f32.mrb[0].mxu0 }
  0xf0   :  { %v223_v43 = vadd.f32 %v216_v41, %v202_v42  ;;  %v204_v44 = vpop.f32.mrb[1].mxu0  ;;  %v377_v42 = vpop.permute.xlu1 %376 }
  0xf1   :  { %v224_v46 = vadd.f32 %v216_v41, %v204_v44  ;;  %v206_v47 = vpop.f32.mrb[2].mxu0 }
  0xf2   :  { %v609_v48 = vmul.f32 -1.442695, %v223_v43  ;;  %v225_v49 = vadd.f32 %v221_v45, %v206_v47  ;;  %v208_v50 = vpop.f32.mrb[3].mxu0 }
  0xf3   :  { %v610_v51 = vmul.f32 -1.442695, %v224_v46  ;;  %v226_v52 = vadd.f32 %v221_v45, %v208_v50 }
  0xf4   :  { %651 = vpow2.f32 %v609_v48  ;;  %v611_v53 = vmul.f32 -1.442695, %v225_v49 }
  0xf5   :  { %653 = vpow2.f32 %v610_v51  ;;  %v612_v54 = vmul.f32 -1.442695, %v226_v52 }
  0xf6   :  { %655 = vpow2.f32 %v611_v53 }
  0xf7   :  { %657 = vpow2.f32 %v612_v54  ;;  %v649_v54 = vld [vmem:[%s865_s9] sm:$0xff]  }
  0xfe   :  { %v652_v55 = vpop.eup %651 }
  0xff   :  { %v654_v56 = vpop.eup %653  ;;  %v239_v57 = vadd.f32 1.0, %v652_v55  ;;  %v650_v55 = vld [vmem:[%s865_s9 + $0x8] sm:$0xff]   ;;  %s693_s9 = smov [#allocation2]  }
 0x100   :  { %v656_v58 = vpop.eup %655  ;;  %v240_v59 = vadd.f32 1.0, %v654_v56  ;;  %v471_v56 = vpop.permute.xlu0 %470  ;;  %s578_s15 = sshll.u32 %s693_s9, 4  ;;  %s579_s15 = int_to_ptr.vmem [resolvable:$true] %s578_s15 }
 0x101   :  { %v658_v60 = vpop.eup %657  ;;  %659 = vrcp.f32 %v239_v57  ;;  %v241_v61 = vadd.f32 1.0, %v656_v58  ;;  %s667_s4 = scalar_lea.vmem %s579_s15, 1024  ;;  %p672_p1 = scmp.lt.s32.totalorder %s579_s15, %s579_s15 }
 0x102   :  { %661 = vrcp.f32 %v240_v59  ;;  %v242_v63 = vadd.f32 1.0, %v658_v60  ;;  %v476_v60 = vpop.permute.xlu1 %475  ;;  %p668_p0 = scmp.ne.s32.totalorder %s579_s15, %s667_s4  ;;  %p673_p2 = scmp.lt.s32.totalorder %s667_s4, %s667_s4 }
 0x103   :  { %663 = vrcp.f32 %v241_v61 }
 0x104   :  { %665 = vrcp.f32 %v242_v63  ;;  %v481_v6 = vpop.permute.xlu0 %480  ;;  %p674_p3 = por %p673_p2, %p672_p1 }
 0x106   :  { %p675_p4 = pnand %p674_p3, %p668_p0 }
 0x10b   :  { %v660_v7 = vpop.eup %659 }
 0x10c   :  { %v662_v9 = vpop.eup %661  ;;  %v345_v10 = vmul.f32 %v660_v7, %v341_v4 }
 0x10d   :  { %v664_v12 = vpop.eup %663  ;;  %v346_v13 = vmul.f32 %v662_v9, %v342_v8 }
 0x10e   :  { %v666_v15 = vpop.eup %665  ;;  %v347_v16 = vmul.f32 %v664_v12, %v343_v11 }
 0x10f   :  { %v348_v17 = vmul.f32 %v666_v15, %v344_v14 }
 0x110   :  { %v353_v18 = vpack.c.bf16 %v347_v16, %v345_v10  ;;  %v486_v10 = vpop.permute.xlu1 %485 }
 0x111   :  { %v354_v19 = vpack.c.bf16 %v348_v17, %v346_v13 }
 0x113   :  { %395 = vmatprep.subr.bf16.mxu1 %v354_v19 }
 0x114   :  { %396 = vmatpush1.bf16.msra.mxu1 %v353_v18 }
 0x117   :  { %621 = vmatmul.mubr.msk.bf16.vlgmr.msra.gmra.mrb[4].mxu1 %vm113_vm11, %v647_v20 }
 0x118   :  { %437 = vmatprep.mubr.bf16.mxu1 %v691_v2 }
 0x11f   :  { %622 = vmatmul.mubr.msk.bf16.gmra.mrb[8].mxu1 %vm113_vm11, %v648_v21 }
 0x1ea   :  { %v429_v23 = vpop.f32.mrb[4].mxu1 }
 0x1eb   :  { %v430_v24 = vadd.f32 %v429_v23, %v362_v22  ;;  %v431_v25 = vpop.f32.mrb[5].mxu1 }
 0x1ec   :  { %v432_v27 = vadd.f32 %v431_v25, %v362_v22  ;;  %v433_v28 = vpop.f32.mrb[6].mxu1 }
 0x1ed   :  { %v434_v29 = vadd.f32 %v433_v28, %v367_v26  ;;  %v435_v30 = vpop.f32.mrb[7].mxu1  ;;  %v448_v32 = vmax.f32 %v430_v24, 0.0 }
 0x1ee   :  { %v436_v31 = vadd.f32 %v435_v30, %v367_v26  ;;  %v449_v34 = vmax.f32 %v432_v27, 0.0 }
 0x1ef   :  { %v450_v33 = vmax.f32 %v434_v29, 0.0 }
 0x1f0   :  { %v451_v35 = vmax.f32 %v436_v31, 0.0 }
 0x1f1   :  { %v460_v36 = vpack.c.bf16 %v450_v33, %v448_v32 }
 0x1f2   :  { %v461_v38 = vpack.c.bf16 %v451_v35, %v449_v34  ;;  %v439_v39 = vpop.f32.mrb[8].mxu1 }
 0x1f3   :  { %v440_v40 = vadd.f32 %v439_v39, %v372_v37  ;;  %v441_v41 = vpop.f32.mrb[9].mxu1 }
 0x1f4   :  { %v442_v43 = vadd.f32 %v441_v41, %v372_v37  ;;  %v443_v44 = vpop.f32.mrb[10].mxu1  ;;  %504 = vmatprep.subr.bf16.mxu0 %v461_v38 }
 0x1f5   :  { %v444_v45 = vadd.f32 %v443_v44, %v377_v42  ;;  %v445_v46 = vpop.f32.mrb[11].mxu1  ;;  %505 = vmatpush1.bf16.msra.mxu0 %v460_v36  ;;  %v452_v48 = vmax.f32 %v440_v40, 0.0 }
 0x1f6   :  { %v446_v47 = vadd.f32 %v445_v46, %v377_v42  ;;  %v453_v50 = vmax.f32 %v442_v43, 0.0 }
 0x1f7   :  { %v454_v49 = vmax.f32 %v444_v45, 0.0 }
 0x1f8   :  { %v455_v51 = vmax.f32 %v446_v47, 0.0 }
 0x1f9   :  { %v462_v52 = vpack.c.bf16 %v454_v49, %v452_v48 }
 0x1fa   :  { %v463_v53 = vpack.c.bf16 %v455_v51, %v453_v50 }
 0x1fc   :  { %506 = vmatprep.subr.bf16.mxu0 %v463_v53 }
 0x1fd   :  { %507 = vmatpush1.bf16.msra.mxu0 %v462_v52 }
 0x200   :  { %625 = vmatmul.mubr.msk.bf16.vlgmr.msra.gmra.mrb[4].mxu0 %vm294_vm0, %v649_v54 }
 0x201   :  { %546 = vmatprep.mubr.bf16.mxu0 %v691_v2 }
 0x208   :  { %626 = vmatmul.mubr.msk.bf16.gmra.mrb[8].mxu0 %vm294_vm0, %v650_v55 }
 0x2d3   :  { %v538_v57 = vpop.f32.mrb[4].mxu0 }
 0x2d4   :  { %v539_v58 = vadd.f32 %v538_v57, %v471_v56  ;;  %v540_v59 = vpop.f32.mrb[5].mxu0 }
 0x2d5   :  { %v541_v61 = vadd.f32 %v540_v59, %v471_v56  ;;  %v542_v62 = vpop.f32.mrb[6].mxu0 }
 0x2d6   :  { %v557_v63 = vmax.f32 %v539_v58, 0.0  ;;  %v543_v0 = vadd.f32 %v542_v62, %v476_v60  ;;  %v544_v1 = vpop.f32.mrb[7].mxu0 }
 0x2d7   :  { %v558_v3 = vmax.f32 %v541_v61, 0.0  ;;  %v545_v4 = vadd.f32 %v544_v1, %v476_v60 }
 0x2d8   :  { %565 = vst [vmem:[#allocation2] sm:$0xff] %v557_v63  ;;  %v559_v2 = vmax.f32 %v543_v0, 0.0 }
 0x2d9   :  { %566 = vst [vmem:[#allocation2 + $0x8] sm:$0xff] %v558_v3  ;;  %v560_v5 = vmax.f32 %v545_v4, 0.0 }
 0x2da   :  { %567 = vst [vmem:[#allocation2 + $0x10] sm:$0xff] %v559_v2 }
 0x2db   :  { %568 = vst [vmem:[#allocation2 + $0x18] sm:$0xff] %v560_v5  ;;  %v548_v7 = vpop.f32.mrb[8].mxu0 }
 0x2dc   :  { %v549_v8 = vadd.f32 %v548_v7, %v481_v6  ;;  %v550_v9 = vpop.f32.mrb[9].mxu0 }
 0x2dd   :  { %v551_v11 = vadd.f32 %v550_v9, %v481_v6  ;;  %v552_v12 = vpop.f32.mrb[10].mxu0 }
 0x2de   :  { %v561_v13 = vmax.f32 %v549_v8, 0.0  ;;  %v553_v14 = vadd.f32 %v552_v12, %v486_v10  ;;  %v554_v15 = vpop.f32.mrb[11].mxu0 }
 0x2df   :  { %v562_v16 = vmax.f32 %v551_v11, 0.0  ;;  %v555_v17 = vadd.f32 %v554_v15, %v486_v10 }
 0x2e0   :  { %569 = vst [vmem:[#allocation2 + $0x20] sm:$0xff] %v561_v13  ;;  %v563_v18 = vmax.f32 %v553_v14, 0.0 }
 0x2e1   :  { %570 = vst [vmem:[#allocation2 + $0x28] sm:$0xff] %v562_v16  ;;  %v564_v19 = vmax.f32 %v555_v17, 0.0 }
 0x2e2   :  { %571 = vst [vmem:[#allocation2 + $0x30] sm:$0xff] %v563_v18 }
 0x2e3   :  { %572 = vst [vmem:[#allocation2 + $0x38] sm:$0xff] %v564_v19 }
 0x2e4   :  { %678 = shalt.err (!%p675_p4)
}
 0x2e5   :  { %s679_s18 = scalar_lea.hbm %s867_s11, 1024 }
 0x2e6   :  { %p680_p5 = scmp.ne.s32.totalorder %s867_s11, %s679_s18  ;;  %p683_p6 = scmp.lt.u32.totalorder %s679_s18, %s867_s11 }
 0x2e8   :  { %p685_p7 = pnand %p683_p6, %p680_p5 }
 0x2ea   :  { %688 = shalt.err (!%p685_p7)
}
 0x2eb   :  { %s694_s20 = smov 256   ;;  %s695_s21 = smov 16  }
 0x2ec   :  { %584 = dma.vmem_to_hbm [thread:$0]  %s579_s15, 1024, %s867_s11, [#allocation3], %s694_s20, %s694_s20, %s695_s21  }
 0x2ed   :  { %689 = dma.done.wait [#allocation3], 1024  }
 0x2ee   :  { %690 = vsyncadd [#allocation3], 4294966272 }
 0x2ef   :  { %588 = vsyncpa [#allocation3], 1 }

</bundles_post_ra>
